<compile_context>
chip_gen: v7x
topology: tpu7x:2x2x1
jax: 0.10.0
libtpu: 0.0.40
codegen_flags: <defaults>
</compile_context>

<pallas_src>
import numpy as np

import jax
import jax.numpy as jnp
from jax.experimental import pallas as pl
from jax.experimental.pallas import tpu as pltpu

EPS = 1e-5
LANE = 128


# ------------------------------ small helpers ------------------------------ #

def _round_up(x, m):
    return (x + m - 1) // m * m


def _pad2(a, rows, cols):
    """Zero-pad a 2-D array up to (rows, cols)."""
    return jnp.zeros((rows, cols), a.dtype).at[: a.shape[0], : a.shape[1]].set(a)


def _pad_row(v, cols):
    """Zero-pad a 1-D vector to a [1, cols] row (broadcast over nodes in-kernel)."""
    return jnp.zeros((1, cols), v.dtype).at[0, : v.shape[0]].set(v)


# ----------------------------- fused Pallas kernel -------------------------- #

def gcnnet1_fused_kernel(a_ref, x_ref, snorm_ref, seg_ref,
                         we_ref, be_ref,
                         w1_ref, b1_ref, c1_ref,
                         wo_ref, bo_ref, co_ref,
                         hg_ref):
    """embedding_h -> gcn_1 -> gcn_o -> mean_nodes, fully resident in VMEM."""
    f32 = jnp.float32
    mxu_dt = we_ref.dtype          # f32 or bf16 (chosen by the wrapper); elementwise stays f32

    a = a_ref[...]                 # A_hat loaded into VMEM once, reused by both GCN layers
    snorm = snorm_ref[...]         # [N, 1] graph_norm factor, broadcast over the 128-lane axis

    # embedding_h: h = x @ We + be
    h = jnp.dot(x_ref[...], we_ref[...], preferred_element_type=f32) + be_ref[...]

    def gcn_layer(h, w_ref, b_ref, c_ref):
        # GraphConv(norm='both') with BatchNorm(eval) pre-folded into W'/b'/c.
        agg = jnp.dot(a, h.astype(mxu_dt), preferred_element_type=f32)          # A_hat @ H
        z = jnp.dot(agg.astype(mxu_dt), w_ref[...], preferred_element_type=f32)  # @ W'
        z = (z + b_ref[...]) * snorm + c_ref[...]     # bias, graph_norm, BN shift (f32 VPU)
        return h + jnp.maximum(z, 0.0)                # relu + residual

    h = gcn_layer(h, w1_ref, b1_ref, c1_ref)          # gcn_1
    h = gcn_layer(h, wo_ref, bo_ref, co_ref)          # gcn_o

    # dgl.mean_nodes: per-graph mean readout (seg rows hold 1/num_nodes_of_graph), kept in f32.
    hg_ref[...] = jnp.dot(seg_ref[...], h, preferred_element_type=f32)


# ------------------------------ parameter prep ------------------------------ #

def init_linear(key, d_in, d_out):
    kw, kb = jax.random.split(key)
    bound = 1.0 / float(np.sqrt(d_in))
    w = jax.random.uniform(kw, (d_in, d_out), jnp.float32, -bound, bound)
    b = jax.random.uniform(kb, (d_out,), jnp.float32, -bound, bound)
    return w, b


def init_gcn_layer(key, d_in, d_out):
    k_lin, kg, kb2, km, kv = jax.random.split(key, 5)
    w, b = init_linear(k_lin, d_in, d_out)
    # Non-trivial eval-mode BN stats so the BN-folding rewrite is actually exercised.
    gamma = 1.0 + 0.1 * jax.random.normal(kg, (d_out,), jnp.float32)
    beta = 0.1 * jax.random.normal(kb2, (d_out,), jnp.float32)
    running_mean = 0.1 * jax.random.normal(km, (d_out,), jnp.float32)
    running_var = 1.0 + 0.1 * jax.random.uniform(kv, (d_out,), jnp.float32)
    return (w, b, gamma, beta, running_mean, running_var)


def prepare_params(params, *, mxu_dtype=jnp.float32):
    """Fold eval-mode BN into the GraphConv weight/bias and pad feature dims to 128 lanes."""
    we, be = params["embedding_h"]
    d_in, d_h = we.shape
    d_out = params["gcn_o"][0].shape[1]
    assert d_h == d_out, "residual connections require in_dim == out_dim"
    dp_in, dp_h = _round_up(d_in, LANE), _round_up(d_h, LANE)

    def fold(p):
        w, b, gamma, beta, mean, var = p
        s = gamma * jax.lax.rsqrt(var + EPS)
        return w * s[None, :], b * s, beta - mean * s

    w1, b1, c1 = fold(params["gcn_1"])
    wo, bo, co = fold(params["gcn_o"])

    return dict(
        d_out=d_out, dp_in=dp_in, dp_h=dp_h, mxu_dtype=mxu_dtype,
        we=_pad2(we, dp_in, dp_h).astype(mxu_dtype), be=_pad_row(be, dp_h),
        w1=_pad2(w1, dp_h, dp_h).astype(mxu_dtype), b1=_pad_row(b1, dp_h), c1=_pad_row(c1, dp_h),
        wo=_pad2(wo, dp_h, dp_h).astype(mxu_dtype), bo=_pad_row(bo, dp_h), co=_pad_row(co, dp_h),
    )


# --------------------------------- forward ---------------------------------- #

def gcnnet1_forward(prep, a_hat, nodes_feat, snorm_n, seg):
    n = nodes_feat.shape[0]
    b_graphs = seg.shape[0]
    mxu_dtype = prep["mxu_dtype"]
    dp_in, dp_h = prep["dp_in"], prep["dp_h"]

    x_p = _pad2(nodes_feat, n, dp_in).astype(mxu_dtype)   # MXU operand dtype
    a_p = a_hat.astype(mxu_dtype)                         # MXU operand dtype

    vmem = pl.BlockSpec(memory_space=pltpu.MemorySpace.VMEM)
    hg_padded = pl.pallas_call(
        gcnnet1_fused_kernel,
        out_shape=jax.ShapeDtypeStruct((b_graphs, dp_h), jnp.float32),
        in_specs=[vmem] * 12,
        out_specs=vmem,
        compiler_params=pltpu.CompilerParams(vmem_limit_bytes=32 * 1024 * 1024),
    )(a_p, x_p, snorm_n, seg,
      prep["we"], prep["be"],
      prep["w1"], prep["b1"], prep["c1"],
      prep["wo"], prep["bo"], prep["co"])
    return hg_padded[:, : prep["d_out"]]                  # drop lane padding


def reference_forward(params, a_hat, nodes_feat, snorm_n, seg):
    """Pure-JAX reference with the original (un-folded, un-padded) math."""
    hp = jax.lax.Precision.HIGHEST

    def gcn(h, p):
        w, b, gamma, beta, mean, var = p
        z = jnp.dot(jnp.dot(a_hat, h, precision=hp), w, precision=hp) + b
        z = z * snorm_n
        z = (z - mean) * jax.lax.rsqrt(var + EPS) * gamma + beta
        return h + jnp.maximum(z, 0.0)

    we, be = params["embedding_h"]
    h = jnp.dot(nodes_feat, we, precision=hp) + be
    h = gcn(h, params["gcn_1"])
    h = gcn(h, params["gcn_o"])
    return jnp.dot(seg, h, precision=hp)


# ----------------------------------- main ------------------------------------ #

if __name__ == "__main__":
    B = 2                 # graphs in the batch
    N_PER = 16            # nodes per graph
    N = B * N_PER         # total nodes
    IN_DIM = 64           # GCNNet1 defaults
    HIDDEN_DIMS = [146, 146]
    OUT_DIM = 146

    key = jax.random.PRNGKey(0)
    k_emb, k_g1, k_go, k_feat = jax.random.split(key, 4)

    params = {
        "embedding_h": init_linear(k_emb, IN_DIM, HIDDEN_DIMS[0]),
        "gcn_1": init_gcn_layer(k_g1, HIDDEN_DIMS[0], HIDDEN_DIMS[1]),
        "gcn_o": init_gcn_layer(k_go, HIDDEN_DIMS[-1], OUT_DIM),
    }

    nodes_feat = jax.random.normal(k_feat, (N, IN_DIM), jnp.float32)

    # Deterministic block-diagonal graph: ring per graph plus a few chords (degree >= 2).
    adj = np.zeros((N, N), np.float32)
    for g in range(B):
        off = g * N_PER
        for i in range(N_PER):
            j = off + (i + 1) % N_PER
            adj[off + i, j] = 1.0
            adj[j, off + i] = 1.0
            if i % 3 == 0:
                c = off + (i + 5) % N_PER
                adj[off + i, c] = 1.0
                adj[c, off + i] = 1.0

    # DGL GraphConv norm='both': A_hat = D^-1/2 A D^-1/2.
    deg = adj.sum(axis=1)
    d_inv_sqrt = 1.0 / np.sqrt(deg)
    a_hat = jnp.asarray(adj * d_inv_sqrt[:, None] * d_inv_sqrt[None, :])

    # nodes_num_norm_sqrt (snorm_n): 1/sqrt(num nodes of the node's graph), shape [N, 1].
    snorm_n = jnp.full((N, 1), 1.0 / np.sqrt(N_PER), jnp.float32)

    # dgl.mean_nodes as a dense [B, N] readout matrix: row g averages that graph's nodes.
    seg_np = np.zeros((B, N), np.float32)
    for g in range(B):
        seg_np[g, g * N_PER:(g + 1) * N_PER] = 1.0 / N_PER
    seg = jnp.asarray(seg_np)

    ref = reference_forward(params, a_hat, nodes_feat, snorm_n, seg)

    # f32 MXU-operand path: tight correctness check against the reference.
    prep_f32 = prepare_params(params, mxu_dtype=jnp.float32)
    hg = jax.block_until_ready(gcnnet1_forward(prep_f32, a_hat, nodes_feat, snorm_n, seg))
    assert hg.shape == (B, OUT_DIM)
    assert jnp.allclose(hg, ref, atol=1e-3, rtol=1e-3), "f32 kernel mismatch vs reference"

    # bf16 MXU-operand path (v6e/v7x fast path; accumulation + elementwise stay f32).
    prep_bf16 = prepare_params(params, mxu_dtype=jnp.bfloat16)
    hg_bf16 = jax.block_until_ready(gcnnet1_forward(prep_bf16, a_hat, nodes_feat, snorm_n, seg))
    assert hg_bf16.shape == (B, OUT_DIM)
    assert float(jnp.max(jnp.abs(hg_bf16 - ref))) < 0.25, "bf16 kernel sanity check failed"

    print("KERNEL_OK")
</pallas_src>

<mosaic_0001>
module attributes {stable_mosaic.version = 11 : i64} {
  func.func @gcnnet1_fused_kernel(%arg0: memref<32x32xf32, #tpu.memory_space<vmem>>, %arg1: memref<32x128xf32, #tpu.memory_space<vmem>>, %arg2: memref<32x1xf32, #tpu.memory_space<vmem>>, %arg3: memref<2x32xf32, #tpu.memory_space<vmem>>, %arg4: memref<128x256xf32, #tpu.memory_space<vmem>>, %arg5: memref<1x256xf32, #tpu.memory_space<vmem>>, %arg6: memref<256x256xf32, #tpu.memory_space<vmem>>, %arg7: memref<1x256xf32, #tpu.memory_space<vmem>>, %arg8: memref<1x256xf32, #tpu.memory_space<vmem>>, %arg9: memref<256x256xf32, #tpu.memory_space<vmem>>, %arg10: memref<1x256xf32, #tpu.memory_space<vmem>>, %arg11: memref<1x256xf32, #tpu.memory_space<vmem>>, %arg12: memref<2x256xf32, #tpu.memory_space<vmem>>) attributes {dimension_semantics = [], scalar_prefetch = 0 : i64, scratch_operands = 0 : i64, tpu.core_type = #tpu.core_type<tc>} {
    %c0 = arith.constant 0 : index
    %c0_0 = arith.constant 0 : index
    %0 = vector.load %arg0[%c0, %c0_0] : memref<32x32xf32, #tpu.memory_space<vmem>>, vector<32x32xf32>
    %c0_1 = arith.constant 0 : index
    %c0_2 = arith.constant 0 : index
    %1 = vector.load %arg2[%c0_1, %c0_2] : memref<32x1xf32, #tpu.memory_space<vmem>>, vector<32x1xf32>
    %c0_3 = arith.constant 0 : index
    %c0_4 = arith.constant 0 : index
    %2 = vector.load %arg1[%c0_3, %c0_4] : memref<32x128xf32, #tpu.memory_space<vmem>>, vector<32x128xf32>
    %c0_5 = arith.constant 0 : index
    %c0_6 = arith.constant 0 : index
    %3 = vector.load %arg4[%c0_5, %c0_6] : memref<128x256xf32, #tpu.memory_space<vmem>>, vector<128x256xf32>
    %cst = arith.constant dense<0.000000e+00> : vector<32x256xf32>
    %4 = tpu.matmul %2, %3, %cst {dimension_numbers = #tpu.dot_dimension_numbers<[1], [0], [0], [1], [0, 0, 1, 1], [], []>} : vector<32x128xf32>, vector<128x256xf32>, vector<32x256xf32> -> vector<32x256xf32>
    %c0_7 = arith.constant 0 : index
    %c0_8 = arith.constant 0 : index
    %5 = vector.load %arg5[%c0_7, %c0_8] : memref<1x256xf32, #tpu.memory_space<vmem>>, vector<1x256xf32>
    %6 = vector.broadcast %5 : vector<1x256xf32> to vector<32x256xf32>
    %7 = arith.addf %4, %6 : vector<32x256xf32>
    %cst_9 = arith.constant dense<0.000000e+00> : vector<32x256xf32>
    %8 = tpu.matmul %0, %7, %cst_9 {dimension_numbers = #tpu.dot_dimension_numbers<[1], [0], [0], [1], [0, 0, 1, 1], [], []>} : vector<32x32xf32>, vector<32x256xf32>, vector<32x256xf32> -> vector<32x256xf32>
    %c0_10 = arith.constant 0 : index
    %c0_11 = arith.constant 0 : index
    %9 = vector.load %arg6[%c0_10, %c0_11] : memref<256x256xf32, #tpu.memory_space<vmem>>, vector<256x256xf32>
    %cst_12 = arith.constant dense<0.000000e+00> : vector<32x256xf32>
    %10 = tpu.matmul %8, %9, %cst_12 {dimension_numbers = #tpu.dot_dimension_numbers<[1], [0], [0], [1], [0, 0, 1, 1], [], []>} : vector<32x256xf32>, vector<256x256xf32>, vector<32x256xf32> -> vector<32x256xf32>
    %c0_13 = arith.constant 0 : index
    %c0_14 = arith.constant 0 : index
    %11 = vector.load %arg7[%c0_13, %c0_14] : memref<1x256xf32, #tpu.memory_space<vmem>>, vector<1x256xf32>
    %12 = vector.broadcast %11 : vector<1x256xf32> to vector<32x256xf32>
    %13 = arith.addf %10, %12 : vector<32x256xf32>
    %14 = vector.broadcast %1 : vector<32x1xf32> to vector<32x256xf32>
    %15 = arith.mulf %13, %14 : vector<32x256xf32>
    %c0_15 = arith.constant 0 : index
    %c0_16 = arith.constant 0 : index
    %16 = vector.load %arg8[%c0_15, %c0_16] : memref<1x256xf32, #tpu.memory_space<vmem>>, vector<1x256xf32>
    %17 = vector.broadcast %16 : vector<1x256xf32> to vector<32x256xf32>
    %18 = arith.addf %15, %17 : vector<32x256xf32>
    %cst_17 = arith.constant 0.000000e+00 : f32
    %19 = vector.broadcast %cst_17 : f32 to vector<32x256xf32>
    %20 = arith.maximumf %18, %19 : vector<32x256xf32>
    %21 = arith.addf %7, %20 : vector<32x256xf32>
    %cst_18 = arith.constant dense<0.000000e+00> : vector<32x256xf32>
    %22 = tpu.matmul %0, %21, %cst_18 {dimension_numbers = #tpu.dot_dimension_numbers<[1], [0], [0], [1], [0, 0, 1, 1], [], []>} : vector<32x32xf32>, vector<32x256xf32>, vector<32x256xf32> -> vector<32x256xf32>
    %c0_19 = arith.constant 0 : index
    %c0_20 = arith.constant 0 : index
    %23 = vector.load %arg9[%c0_19, %c0_20] : memref<256x256xf32, #tpu.memory_space<vmem>>, vector<256x256xf32>
    %cst_21 = arith.constant dense<0.000000e+00> : vector<32x256xf32>
    %24 = tpu.matmul %22, %23, %cst_21 {dimension_numbers = #tpu.dot_dimension_numbers<[1], [0], [0], [1], [0, 0, 1, 1], [], []>} : vector<32x256xf32>, vector<256x256xf32>, vector<32x256xf32> -> vector<32x256xf32>
    %c0_22 = arith.constant 0 : index
    %c0_23 = arith.constant 0 : index
    %25 = vector.load %arg10[%c0_22, %c0_23] : memref<1x256xf32, #tpu.memory_space<vmem>>, vector<1x256xf32>
    %26 = vector.broadcast %25 : vector<1x256xf32> to vector<32x256xf32>
    %27 = arith.addf %24, %26 : vector<32x256xf32>
    %28 = vector.broadcast %1 : vector<32x1xf32> to vector<32x256xf32>
    %29 = arith.mulf %27, %28 : vector<32x256xf32>
    %c0_24 = arith.constant 0 : index
    %c0_25 = arith.constant 0 : index
    %30 = vector.load %arg11[%c0_24, %c0_25] : memref<1x256xf32, #tpu.memory_space<vmem>>, vector<1x256xf32>
    %31 = vector.broadcast %30 : vector<1x256xf32> to vector<32x256xf32>
    %32 = arith.addf %29, %31 : vector<32x256xf32>
    %cst_26 = arith.constant 0.000000e+00 : f32
    %33 = vector.broadcast %cst_26 : f32 to vector<32x256xf32>
    %34 = arith.maximumf %32, %33 : vector<32x256xf32>
    %35 = arith.addf %21, %34 : vector<32x256xf32>
    %c0_27 = arith.constant 0 : index
    %c0_28 = arith.constant 0 : index
    %36 = vector.load %arg3[%c0_27, %c0_28] : memref<2x32xf32, #tpu.memory_space<vmem>>, vector<2x32xf32>
    %cst_29 = arith.constant dense<0.000000e+00> : vector<2x256xf32>
    %37 = tpu.matmul %36, %35, %cst_29 {dimension_numbers = #tpu.dot_dimension_numbers<[1], [0], [0], [1], [0, 0, 1, 1], [], []>} : vector<2x32xf32>, vector<32x256xf32>, vector<2x256xf32> -> vector<2x256xf32>
    %c0_30 = arith.constant 0 : index
    %c0_31 = arith.constant 0 : index
    %38 = vector.load %arg12[%c0_30, %c0_31] : memref<2x256xf32, #tpu.memory_space<vmem>>, vector<2x256xf32>
    tpu.vector_store %arg12[%c0_30, %c0_31], %37 {strides = array<i32>} : memref<2x256xf32, #tpu.memory_space<vmem>>, vector<2x256xf32>,
    return
  }
}

</mosaic_0001>

<bundles_post_ra>
// kernel: tpu_custom_call.1
= control target key start
LH: loop header
LB: loop body
LE: loop exit
PB: predicated region body
PF: predicated region fallthrough
CT: control target
= control target key end

     0   :  { %17 = vsyncpa [#allocation3], 0  ;;  %s1634_s0 = inlined_call_operand.vmem [shape: f32[32,32], index: 0, kind: input, shape index: {}]   ;;  %s1635_s1 = inlined_call_operand.hbm [shape: f32[32,128], index: 1, kind: input, shape index: {}]   ;;  %s1636_s2 = inlined_call_operand.vmem [shape: f32[32,1], index: 2, kind: input, shape index: {}]   ;;  %s1637_s3 = inlined_call_operand.vmem [shape: f32[2,32], index: 3, kind: input, shape index: {}]   ;;  %s1638_s4 = inlined_call_operand.hbm [shape: f32[128,256], index: 4, kind: input, shape index: {}]   ;;  %s1639_s5 = inlined_call_operand.vmem [shape: f32[1,256], index: 5, kind: input, shape index: {}]   ;;  %s1640_s6 = inlined_call_operand.hbm [shape: f32[256,256], index: 6, kind: input, shape index: {}]   ;;  %s1641_s7 = inlined_call_operand.vmem [shape: f32[1,256], index: 7, kind: input, shape index: {}]   ;;  %s1642_s8 = inlined_call_operand.vmem [shape: f32[1,256], index: 8, kind: input, shape index: {}]   ;;  %s1643_s9 = inlined_call_operand.hbm [shape: f32[256,256], index: 9, kind: input, shape index: {}]   ;;  %s1644_s10 = inlined_call_operand.vmem [shape: f32[1,256], index: 10, kind: input, shape index: {}]   ;;  %s1645_s11 = inlined_call_operand.vmem [shape: f32[1,256], index: 11, kind: input, shape index: {}]   ;;  %s1646_s12 = inlined_call_operand.hbm [shape: f32[2,256], index: 12, kind: output, shape index: {}]  }
   0x1   :  { %18 = vsyncpa [#allocation6], 0 }
   0x2   :  { %19 = vsyncpa [#allocation9], 0 }
   0x3   :  { %20 = vsyncpa [#allocation4], 0  ;;  %s1300_s21 = smov [#allocation5]   ;;  %s1182_s25 = scalar_lea.hbm %s1638_s4, 4096 }
   0x4   :  { %s44_s22 = sshll.u32 %s1300_s21, 4  ;;  %p1183_p0 = scmp.ne.s32.totalorder %s1638_s4, %s1182_s25  ;;  %s45_s22 = int_to_ptr.vmem [resolvable:$true] %s44_s22 }
   0x5   :  { %p1186_p1 = scmp.lt.u32.totalorder %s1182_s25, %s1638_s4 }
   0x7   :  { %p1188_p2 = pnand %p1186_p1, %p1183_p0 }
   0x9   :  { %1191 = shalt.err (!%p1188_p2)
}
   0xa   :  { %s1192_s30 = scalar_lea.vmem %s45_s22, 4096  ;;  %p1197_p4 = scmp.lt.s32.totalorder %s45_s22, %s45_s22 }
   0xb   :  { %p1193_p3 = scmp.ne.s32.totalorder %s45_s22, %s1192_s30  ;;  %p1198_p5 = scmp.lt.s32.totalorder %s1192_s30, %s1192_s30 }
   0xd   :  { %p1199_p6 = por %p1198_p5, %p1197_p4 }
   0xf   :  { %p1200_p7 = pnand %p1199_p6, %p1193_p3 }
  0x11   :  { %1203 = shalt.err (!%p1200_p7)
}
  0x12   :  { %s1301_s13 = smov 256   ;;  %s1302_s14 = smov 16  }
  0x13   :  { %50 = dma.hbm_to_vmem [thread:$0]  %s1638_s4, 4096, %s45_s22, [#allocation6], %s1301_s13, %s1301_s13, %s1302_s14  }
  0x14   :  { %s1303_s17 = smov [#allocation2]   ;;  %s1204_s21 = scalar_lea.hbm %s1635_s1, 512 }
  0x15   :  { %s28_s18 = sshll.u32 %s1303_s17, 4  ;;  %p1205_p8 = scmp.ne.s32.totalorder %s1635_s1, %s1204_s21  ;;  %s29_s18 = int_to_ptr.vmem [resolvable:$true] %s28_s18 }
  0x16   :  { %p1208_p9 = scmp.lt.u32.totalorder %s1204_s21, %s1635_s1 }
  0x18   :  { %p1210_p10 = pnand %p1208_p9, %p1205_p8 }
  0x1a   :  { %1213 = shalt.err (!%p1210_p10)
}
  0x1b   :  { %s1214_s27 = scalar_lea.vmem %s29_s18, 512  ;;  %p1219_p12 = scmp.lt.s32.totalorder %s29_s18, %s29_s18 }
  0x1c   :  { %p1215_p11 = scmp.ne.s32.totalorder %s29_s18, %s1214_s27  ;;  %p1220_p13 = scmp.lt.s32.totalorder %s1214_s27, %s1214_s27 }
  0x1e   :  { %p1221_p0 = por %p1220_p13, %p1219_p12 }
  0x20   :  { %p1222_p1 = pnand %p1221_p0, %p1215_p11 }
  0x22   :  { %1225 = shalt.err (!%p1222_p1)
}
  0x23   :  { %s1304_s4 = smov 128   ;;  %s1305_s22 = smov 8  }
  0x24   :  { %34 = dma.hbm_to_vmem [thread:$0]  %s1635_s1, 512, %s29_s18, [#allocation3], %s1304_s4, %s1304_s4, %s1305_s22  }
  0x25   :  { %s1306_s30 = smov [#allocation7]   ;;  %s1307_s16 = smov [#allocation8]  }
  0x26   :  { %s58_s15 = sshll.u32 %s1306_s30, 4  ;;  %s74_s17 = sshll.u32 %s1307_s16, 4  ;;  %s59_s15 = int_to_ptr.vmem [resolvable:$true] %s58_s15  ;;  %s1403_s17 = int_to_ptr.vmem [resolvable:$true] %s74_s17 }
  0x27   :  { %s1226_s21 = scalar_lea.hbm %s1640_s6, 8192 }
  0x28   :  { %p1227_p2 = scmp.ne.s32.totalorder %s1640_s6, %s1226_s21  ;;  %p1230_p3 = scmp.lt.u32.totalorder %s1226_s21, %s1640_s6 }
  0x2a   :  { %p1232_p4 = pnand %p1230_p3, %p1227_p2 }
  0x2c   :  { %1235 = shalt.err (!%p1232_p4)
}
  0x2d   :  { %s1236_s1 = scalar_lea.vmem %s59_s15, 8192  ;;  %p1241_p6 = scmp.lt.s32.totalorder %s59_s15, %s59_s15 }
  0x2e   :  { %p1237_p5 = scmp.ne.s32.totalorder %s59_s15, %s1236_s1  ;;  %p1242_p7 = scmp.lt.s32.totalorder %s1236_s1, %s1236_s1 }
  0x30   :  { %p1243_p8 = por %p1242_p7, %p1241_p6 }
  0x32   :  { %p1244_p9 = pnand %p1243_p8, %p1237_p5 }
  0x34   :  { %1247 = shalt.err (!%p1244_p9)
}
  0x35   :  { %64 = dma.hbm_to_vmem [thread:$0]  %s1640_s6, 8192, %s59_s15, [#allocation6], %s1301_s13, %s1301_s13, %s1302_s14  }
  0x36   :  { %s1248_s28 = scalar_lea.hbm %s1643_s9, 8192 }
  0x37   :  { %p1249_p10 = scmp.ne.s32.totalorder %s1643_s9, %s1248_s28  ;;  %p1252_p11 = scmp.lt.u32.totalorder %s1248_s28, %s1643_s9 }
  0x39   :  { %p1254_p12 = pnand %p1252_p11, %p1249_p10 }
  0x3b   :  { %1257 = shalt.err (!%p1254_p12)
}
  0x3c   :  { %s1258_s20 = scalar_lea.vmem %s1403_s17, 8192  ;;  %p1263_p0 = scmp.lt.s32.totalorder %s1403_s17, %s1403_s17 }
  0x3d   :  { %p1259_p13 = scmp.ne.s32.totalorder %s1403_s17, %s1258_s20  ;;  %p1264_p1 = scmp.lt.s32.totalorder %s1258_s20, %s1258_s20 }
  0x3f   :  { %p1265_p2 = por %p1264_p1, %p1263_p0 }
  0x41   :  { %p1266_p3 = pnand %p1265_p2, %p1259_p13 }
  0x43   :  { %1269 = shalt.err (!%p1266_p3)
}
  0x44   :  { %80 = dma.hbm_to_vmem [thread:$0]  %s1643_s9, 8192, %s1403_s17, [#allocation9], %s1301_s13, %s1301_s13, %s1302_s14  }
  0x45   :  { %1292 = dma.done.wait [#allocation3], 512  }
  0x46   :  { %1293 = vsyncadd [#allocation3], 4294966784 }
  0x47   :  { %1294 = dma.done.wait [#allocation6], 12288  }
  0x48   :  { %1295 = vsyncadd [#allocation6], 4294955008 }
  0x49   :  { %1296 = dma.done.wait [#allocation9], 8192  }
  0x4a   :  { %1297 = vsyncadd [#allocation9], 4294959104  ;;  %v1308_v0 = vmov 0.0   ;;  %v110_v1 = vld [vmem:[#allocation5 + $0x8] sm:$0xff]  ;;  %v112_v2 = vld [vmem:[#allocation5 + $0x18] sm:$0xff]  ;;  %v143_v53 = vlaneseq  ;;  %vm242_vm0 = vcmask 261120  }
  0x4b   :  { %217 = vmatprep.mubr.f32.mxu0 %v1308_v0  ;;  %319 = vmatprep.mubr.f32.mxu1 %v1308_v0  ;;  %v109_v3 = vld [vmem:[#allocation5] sm:$0xff]  ;;  %v985_v4 = vpack.c.bf16 %v112_v2, %v110_v1  ;;  %v111_v5 = vld [vmem:[#allocation5 + $0x10] sm:$0xff]  ;;  %v114_v6 = vld [vmem:[#allocation5 + $0x28] sm:$0xff]  ;;  %s1310_s15 = smov [#allocation10]  }
  0x4c   :  { %v116_v7 = vld [vmem:[#allocation5 + $0x38] sm:$0xff]  ;;  %v987_v8 = vpack.c.bf16 %v111_v5, %v109_v3  ;;  %v113_v10 = vld [vmem:[#allocation5 + $0x20] sm:$0xff]  ;;  %v115_v11 = vld [vmem:[#allocation5 + $0x30] sm:$0xff]  ;;  %v144_v54 = vshrl.u32 %v143_v53, 7  ;;  %s964_s9 = sshll.u32 %s1310_s15, 4  ;;  %s965_s9 = int_to_ptr.vmem [resolvable:$true] %s964_s9 }
  0x4d   :  { %v989_v9 = vpack.c.bf16 %v116_v7, %v114_v6  ;;  %v118_v12 = vld [vmem:[#allocation5 + $0x48] sm:$0xff]  ;;  %986 = vmatprep.subr.bf16.mxu0 %v985_v4  ;;  %v120_v13 = vld [vmem:[#allocation5 + $0x58] sm:$0xff]  ;;  %v991_v14 = vpack.c.bf16 %v115_v11, %v113_v10  ;;  %v117_v16 = vld [vmem:[#allocation5 + $0x40] sm:$0xff]  ;;  %s1270_s13 = scalar_lea.vmem %s965_s9, 64  ;;  %p1275_p5 = scmp.lt.s32.totalorder %s965_s9, %s965_s9 }
  0x4e   :  { %988 = vmatpush1.bf16.msra.mxu0 %v987_v8  ;;  %v993_v15 = vpack.c.bf16 %v120_v13, %v118_v12  ;;  %v119_v17 = vld [vmem:[#allocation5 + $0x50] sm:$0xff]  ;;  %v122_v18 = vld [vmem:[#allocation5 + $0x68] sm:$0xff]  ;;  %v124_v19 = vld [vmem:[#allocation5 + $0x78] sm:$0xff]  ;;  %v1445_v55 = vsub.s32 1, %v144_v54  ;;  %v1450_v57 = vsub.s32 0, %v144_v54  ;;  %p1271_p4 = scmp.ne.s32.totalorder %s965_s9, %s1270_s13  ;;  %p1276_p6 = scmp.lt.s32.totalorder %s1270_s13, %s1270_s13 }
  0x4f   :  { %990 = vmatprep.subr.bf16.mxu0 %v989_v9  ;;  %v995_v20 = vpack.c.bf16 %v119_v17, %v117_v16  ;;  %v997_v21 = vpack.c.bf16 %v124_v19, %v122_v18  ;;  %v121_v22 = vld [vmem:[#allocation5 + $0x60] sm:$0xff]  ;;  %v123_v23 = vld [vmem:[#allocation5 + $0x70] sm:$0xff]  ;;  %v126_v24 = vld [vmem:[#allocation5 + $0x88] sm:$0xff] }
  0x50   :  { %v128_v25 = vld [vmem:[#allocation5 + $0x98] sm:$0xff]  ;;  %v999_v26 = vpack.c.bf16 %v123_v23, %v121_v22  ;;  %v125_v28 = vld [vmem:[#allocation5 + $0x80] sm:$0xff]  ;;  %v127_v29 = vld [vmem:[#allocation5 + $0x90] sm:$0xff]  ;;  %p1277_p7 = por %p1276_p6, %p1275_p5 }
  0x51   :  { %v1001_v27 = vpack.c.bf16 %v128_v25, %v126_v24  ;;  %v130_v30 = vld [vmem:[#allocation5 + $0xa8] sm:$0xff]  ;;  %v132_v31 = vld [vmem:[#allocation5 + $0xb8] sm:$0xff]  ;;  %v1003_v32 = vpack.c.bf16 %v127_v29, %v125_v28  ;;  %v129_v34 = vld [vmem:[#allocation5 + $0xa0] sm:$0xff] }
  0x52   :  { %992 = vmatpush1.bf16.msra.mxu0 %v991_v14  ;;  %v1005_v33 = vpack.c.bf16 %v132_v31, %v130_v30  ;;  %v131_v35 = vld [vmem:[#allocation5 + $0xb0] sm:$0xff]  ;;  %v134_v36 = vld [vmem:[#allocation5 + $0xc8] sm:$0xff]  ;;  %v136_v37 = vld [vmem:[#allocation5 + $0xd8] sm:$0xff]  ;;  %p1278_p8 = pnand %p1277_p7, %p1271_p4 }
  0x53   :  { %994 = vmatprep.subr.bf16.mxu0 %v993_v15  ;;  %v1007_v38 = vpack.c.bf16 %v131_v35, %v129_v34  ;;  %v1009_v39 = vpack.c.bf16 %v136_v37, %v134_v36  ;;  %v133_v40 = vld [vmem:[#allocation5 + $0xc0] sm:$0xff]  ;;  %v135_v41 = vld [vmem:[#allocation5 + $0xd0] sm:$0xff]  ;;  %v138_v42 = vld [vmem:[#allocation5 + $0xe8] sm:$0xff] }
  0x54   :  { %v140_v43 = vld [vmem:[#allocation5 + $0xf8] sm:$0xff]  ;;  %v1011_v44 = vpack.c.bf16 %v135_v41, %v133_v40  ;;  %v137_v46 = vld [vmem:[#allocation5 + $0xe0] sm:$0xff]  ;;  %v139_v47 = vld [vmem:[#allocation5 + $0xf0] sm:$0xff] }
  0x55   :  { %v1013_v45 = vpack.c.bf16 %v140_v43, %v138_v42  ;;  %v1015_v48 = vpack.c.bf16 %v139_v47, %v137_v46  ;;  %v105_v49 = vld [vmem:[#allocation2] sm:$0xff]  ;;  %v106_v50 = vld [vmem:[#allocation2 + $0x8] sm:$0xff]  ;;  %v107_v51 = vld [vmem:[#allocation2 + $0x10] sm:$0xff] }
  0x56   :  { %996 = vmatpush1.bf16.msra.mxu0 %v995_v20  ;;  %v108_v52 = vld [vmem:[#allocation2 + $0x18] sm:$0xff]  ;;  %v141_v56 = vld [vmem:[%s1639_s5] sm:$0x3]  ;;  %v345_v12 = vld [vmem:[#allocation7 + $0x8] sm:$0xff] }
  0x57   :  { %998 = vmatprep.subr.bf16.mxu0 %v997_v21  ;;  %v150_v60 = vrot.slane %v141_v56, %v1445_v55  ;;  %v146_v61 = vrot.slane %v141_v56, %v1450_v57  ;;  %v347_v13 = vld [vmem:[#allocation7 + $0x18] sm:$0xff]  ;;  %v344_v19 = vld [vmem:[#allocation7] sm:$0xff]  ;;  %v346_v20 = vld [vmem:[#allocation7 + $0x10] sm:$0xff] }
  0x58   :  { %v1025_v18 = vpack.c.bf16 %v347_v13, %v345_v12  ;;  %v349_v22 = vld [vmem:[#allocation7 + $0x28] sm:$0xff]  ;;  %v351_v23 = vld [vmem:[#allocation7 + $0x38] sm:$0xff]  ;;  %v1481_v24 = vld [vmem:[%s1634_s0] sm:$0xff]  ;;  %v1027_v25 = vpack.c.bf16 %v346_v20, %v344_v19 }
  0x59   :  { %v350_v28 = vld [vmem:[#allocation7 + $0x30] sm:$0xff]  ;;  %v353_v29 = vld [vmem:[#allocation7 + $0x48] sm:$0xff]  ;;  %v355_v30 = vld [vmem:[#allocation7 + $0x58] sm:$0xff] }
  0x5a   :  { %1000 = vmatpush1.bf16.msra.mxu0 %v999_v26  ;;  %v1029_v26 = vpack.c.bf16 %v351_v23, %v349_v22  ;;  %v1489_v31 = vld [vmem:[%s1634_s0 + $0x8] sm:$0xff]  ;;  %v352_v34 = vld [vmem:[#allocation7 + $0x40] sm:$0xff]  ;;  %v354_v35 = vld [vmem:[#allocation7 + $0x50] sm:$0xff] }
  0x5b   :  { %1002 = vmatprep.subr.bf16.mxu0 %v1001_v27  ;;  %v348_v27 = vld [vmem:[#allocation7 + $0x20] sm:$0xff]  ;;  %v357_v36 = vld [vmem:[#allocation7 + $0x68] sm:$0xff]  ;;  %v359_v37 = vld [vmem:[#allocation7 + $0x78] sm:$0xff] }
  0x5c   :  { %v1037_v40 = vpack.c.bf16 %v359_v37, %v357_v36  ;;  %v356_v41 = vld [vmem:[#allocation7 + $0x60] sm:$0xff]  ;;  %v358_v42 = vld [vmem:[#allocation7 + $0x70] sm:$0xff]  ;;  %v361_v43 = vld [vmem:[#allocation7 + $0x88] sm:$0xff] }
  0x5d   :  { %v1039_v46 = vpack.c.bf16 %v358_v42, %v356_v41  ;;  %v364_v54 = vld [vmem:[#allocation7 + $0xa0] sm:$0xff]  ;;  %v366_v56 = vld [vmem:[#allocation7 + $0xb0] sm:$0xff]  ;;  %v377_v12 = vld [vmem:[#allocation7 + $0x108] sm:$0xff] }
  0x5e   :  { %1004 = vmatpush1.bf16.msra.mxu0 %v1003_v32  ;;  %v1031_v32 = vpack.c.bf16 %v350_v28, %v348_v27  ;;  %v379_v13 = vld [vmem:[#allocation7 + $0x118] sm:$0xff]  ;;  %v376_v19 = vld [vmem:[#allocation7 + $0x100] sm:$0xff]  ;;  %v378_v20 = vld [vmem:[#allocation7 + $0x110] sm:$0xff] }
  0x5f   :  { %1006 = vmatprep.subr.bf16.mxu0 %v1005_v33  ;;  %v1033_v33 = vpack.c.bf16 %v355_v30, %v353_v29  ;;  %v383_v22 = vld [vmem:[#allocation7 + $0x138] sm:$0xff]  ;;  %v1059_v23 = vpack.c.bf16 %v378_v20, %v376_v19  ;;  %v382_v27 = vld [vmem:[#allocation7 + $0x130] sm:$0xff]  ;;  %v385_v28 = vld [vmem:[#allocation7 + $0x148] sm:$0xff] }
  0x60   :  { %v387_v29 = vld [vmem:[#allocation7 + $0x158] sm:$0xff]  ;;  %v390_v41 = vld [vmem:[#allocation7 + $0x170] sm:$0xff]  ;;  %v393_v42 = vld [vmem:[#allocation7 + $0x188] sm:$0xff] }
  0x61   :  { %v391_v36 = vld [vmem:[#allocation7 + $0x178] sm:$0xff] }
  0x62   :  { %1008 = vmatpush1.bf16.msra.mxu0 %v1007_v38  ;;  %v1497_v38 = vld [vmem:[%s1634_s0 + $0x10] sm:$0xff]  ;;  %v104_v19 = vld [vmem:[%s1636_s2 + $0x18] sm:$0xff] }
  0x63   :  { %1010 = vmatprep.subr.bf16.mxu0 %v1009_v39  ;;  %v1035_v39 = vpack.c.bf16 %v354_v35, %v352_v34  ;;  %v386_v34 = vld [vmem:[#allocation7 + $0x150] sm:$0xff]  ;;  %v389_v35 = vld [vmem:[#allocation7 + $0x168] sm:$0xff] }
  0x66   :  { %1012 = vmatpush1.bf16.msra.mxu0 %v1011_v44  ;;  %v363_v44 = vld [vmem:[#allocation7 + $0x98] sm:$0xff] }
  0x67   :  { %1014 = vmatprep.subr.bf16.mxu0 %v1013_v45  ;;  %v1505_v45 = vld [vmem:[%s1634_s0 + $0x18] sm:$0xff]  ;;  %v1041_v47 = vpack.c.bf16 %v363_v44, %v361_v43 }
  0x68   :  { %v395_v43 = vld [vmem:[#allocation7 + $0x198] sm:$0xff] }
  0x6a   :  { %1016 = vmatpush1.bf16.msra.mxu0 %v1015_v48  ;;  %v360_v48 = vld [vmem:[#allocation7 + $0x80] sm:$0xff] }
  0x6d   :  { %218 = vmatmul.mubr.f32.vlgmr.msra.gmra.mrb[0].mxu0 %v105_v49  ;;  %v362_v49 = vld [vmem:[#allocation7 + $0x90] sm:$0xff] }
  0x6e   :  { %223 = vmatprep.mubr.f32.mxu0 %v1308_v0 }
  0x71   :  { %224 = vmatmul.mubr.f32.gmra.mrb[2].mxu0 %v106_v50  ;;  %v365_v50 = vld [vmem:[#allocation7 + $0xa8] sm:$0xff] }
  0x72   :  { %229 = vmatprep.mubr.f32.mxu0 %v1308_v0 }
  0x75   :  { %230 = vmatmul.mubr.f32.gmra.mrb[4].mxu0 %v107_v51  ;;  %v367_v51 = vld [vmem:[#allocation7 + $0xb8] sm:$0xff] }
  0x76   :  { %235 = vmatprep.mubr.f32.mxu0 %v1308_v0  ;;  %v1045_v53 = vpack.c.bf16 %v367_v51, %v365_v50  ;;  %v399_v50 = vld [vmem:[#allocation7 + $0x1b8] sm:$0xff] }
  0x79   :  { %236 = vmatmul.mubr.f32.gmra.mrb[6].mxu0 %v108_v52  ;;  %v1043_v52 = vpack.c.bf16 %v362_v49, %v360_v48  ;;  %v394_v48 = vld [vmem:[#allocation7 + $0x190] sm:$0xff]  ;;  %v397_v49 = vld [vmem:[#allocation7 + $0x1a8] sm:$0xff] }
 0x140   :  { %v219_v58 = vpop.f32.mrb[0].mxu0 }
 0x141   :  { %v221_v59 = vpop.f32.mrb[1].mxu0  ;;  %v1460_v4 = vadd.f32 %v219_v58, %v146_v61  ;;  %v369_v58 = vld [vmem:[#allocation7 + $0xc8] sm:$0xff] }
 0x142   :  { %v1456_v2 = vadd.f32 %v221_v59, %v150_v60  ;;  %v371_v59 = vld [vmem:[#allocation7 + $0xd8] sm:$0xff] }
 0x144   :  { %v225_v62 = vpop.f32.mrb[2].mxu0 }
 0x145   :  { %v1454_v63 = vadd.f32 %v225_v62, %v146_v61  ;;  %v227_v1 = vpop.f32.mrb[3].mxu0  ;;  %v368_v62 = vld [vmem:[#allocation7 + $0xc0] sm:$0xff] }
 0x146   :  { %v1458_v3 = vadd.f32 %v227_v1, %v150_v60  ;;  %v370_v1 = vld [vmem:[#allocation7 + $0xd0] sm:$0xff] }
 0x147   :  { %v1019_v8 = vpack.c.bf16 %v1454_v63, %v1460_v4 }
 0x148   :  { %v231_v5 = vpop.f32.mrb[4].mxu0  ;;  %v1017_v6 = vpack.c.bf16 %v1458_v3, %v1456_v2 }
 0x149   :  { %v233_v7 = vpop.f32.mrb[5].mxu0  ;;  %v1472_v16 = vadd.f32 %v231_v5, %v146_v61  ;;  %v373_v5 = vld [vmem:[#allocation7 + $0xe8] sm:$0xff] }
 0x14a   :  { %1018 = vmatprep.subr.bf16.mxu1 %v1017_v6  ;;  %v1468_v14 = vadd.f32 %v233_v7, %v150_v60  ;;  %v375_v6 = vld [vmem:[#allocation7 + $0xf8] sm:$0xff]  ;;  %v1051_v7 = vpack.c.bf16 %v370_v1, %v368_v62  ;;  %v402_v62 = vld [vmem:[#allocation7 + $0x1d0] sm:$0xff]  ;;  %v405_v1 = vld [vmem:[#allocation7 + $0x1e8] sm:$0xff] }
 0x14b   :  { %1020 = vmatpush1.bf16.msra.mxu1 %v1019_v8  ;;  %v1053_v8 = vpack.c.bf16 %v375_v6, %v373_v5  ;;  %v407_v5 = vld [vmem:[#allocation7 + $0x1f8] sm:$0xff] }
 0x14c   :  { %v237_v9 = vpop.f32.mrb[6].mxu0 }
 0x14d   :  { %v1466_v10 = vadd.f32 %v237_v9, %v146_v61  ;;  %v239_v11 = vpop.f32.mrb[7].mxu0  ;;  %v1049_v61 = vpack.c.bf16 %v371_v59, %v369_v58  ;;  %v372_v9 = vld [vmem:[#allocation7 + $0xe0] sm:$0xff]  ;;  %v403_v58 = vld [vmem:[#allocation7 + $0x1d8] sm:$0xff] }
 0x14e   :  { %v1470_v15 = vadd.f32 %v239_v11, %v150_v60  ;;  %v1047_v60 = vpack.c.bf16 %v366_v56, %v364_v54  ;;  %v374_v11 = vld [vmem:[#allocation7 + $0xf0] sm:$0xff]  ;;  %v401_v56 = vld [vmem:[#allocation7 + $0x1c8] sm:$0xff] }
 0x14f   :  { %v1023_v21 = vpack.c.bf16 %v1466_v10, %v1472_v16  ;;  %v398_v54 = vld [vmem:[#allocation7 + $0x1b0] sm:$0xff] }
 0x150   :  { %v1021_v17 = vpack.c.bf16 %v1470_v15, %v1468_v14 }
 0x152   :  { %1022 = vmatprep.subr.bf16.mxu1 %v1021_v17  ;;  %v1055_v17 = vpack.c.bf16 %v374_v11, %v372_v9  ;;  %v406_v9 = vld [vmem:[#allocation7 + $0x1f0] sm:$0xff] }
 0x153   :  { %1024 = vmatpush1.bf16.msra.mxu1 %v1023_v21  ;;  %v381_v21 = vld [vmem:[#allocation7 + $0x128] sm:$0xff] }
 0x154   :  { %1026 = vmatprep.subr.bf16.mxu1 %v1025_v18  ;;  %v1057_v18 = vpack.c.bf16 %v379_v13, %v377_v12  ;;  %v101_v12 = vld [vmem:[%s1636_s2] sm:$0xff]  ;;  %v103_v13 = vld [vmem:[%s1636_s2 + $0x10] sm:$0xff] }
 0x156   :  { %975 = vmatmul.mubr.msk.f32.vlgmr.msra.gmra.mrb[0].mxu1 %vm242_vm0, %v1481_v24 }
 0x157   :  { %325 = vmatprep.mubr.f32.mxu1 %v1308_v0  ;;  %1028 = vmatpush1.bf16.msra.mxu1 %v1027_v25  ;;  %v1061_v25 = vpack.c.bf16 %v383_v22, %v381_v21 }
 0x158   :  { %1030 = vmatprep.subr.bf16.mxu1 %v1029_v26  ;;  %v380_v26 = vld [vmem:[#allocation7 + $0x120] sm:$0xff] }
 0x159   :  { %v1063_v30 = vpack.c.bf16 %v382_v27, %v380_v26 }
 0x15a   :  { %976 = vmatmul.mubr.msk.f32.gmra.mrb[2].mxu1 %vm242_vm0, %v1489_v31 }
 0x15b   :  { %331 = vmatprep.mubr.f32.mxu1 %v1308_v0  ;;  %1032 = vmatpush1.bf16.msra.mxu1 %v1031_v32  ;;  %v1065_v32 = vpack.c.bf16 %v387_v29, %v385_v28  ;;  %v663_v29 = vld [vmem:[#allocation8 + $0x8] sm:$0xff] }
 0x15c   :  { %1034 = vmatprep.subr.bf16.mxu1 %v1033_v33  ;;  %v384_v33 = vld [vmem:[#allocation7 + $0x140] sm:$0xff] }
 0x15d   :  { %v1067_v37 = vpack.c.bf16 %v386_v34, %v384_v33  ;;  %v664_v34 = vld [vmem:[#allocation8 + $0x10] sm:$0xff] }
 0x15e   :  { %977 = vmatmul.mubr.msk.f32.gmra.mrb[4].mxu1 %vm242_vm0, %v1497_v38 }
 0x15f   :  { %337 = vmatprep.mubr.f32.mxu1 %v1308_v0  ;;  %1036 = vmatpush1.bf16.msra.mxu1 %v1035_v39  ;;  %v1069_v39 = vpack.c.bf16 %v391_v36, %v389_v35  ;;  %v667_v35 = vld [vmem:[#allocation8 + $0x28] sm:$0xff]  ;;  %v669_v36 = vld [vmem:[#allocation8 + $0x38] sm:$0xff] }
 0x160   :  { %1038 = vmatprep.subr.bf16.mxu1 %v1037_v40  ;;  %v388_v40 = vld [vmem:[#allocation7 + $0x160] sm:$0xff] }
 0x161   :  { %v1071_v44 = vpack.c.bf16 %v390_v41, %v388_v40  ;;  %v666_v40 = vld [vmem:[#allocation8 + $0x20] sm:$0xff]  ;;  %v668_v41 = vld [vmem:[#allocation8 + $0x30] sm:$0xff] }
 0x162   :  { %978 = vmatmul.mubr.msk.f32.gmra.mrb[6].mxu1 %vm242_vm0, %v1505_v45 }
 0x163   :  { %1040 = vmatpush1.bf16.msra.mxu1 %v1039_v46  ;;  %v1073_v46 = vpack.c.bf16 %v395_v43, %v393_v42  ;;  %v671_v42 = vld [vmem:[#allocation8 + $0x48] sm:$0xff]  ;;  %v673_v43 = vld [vmem:[#allocation8 + $0x58] sm:$0xff] }
 0x164   :  { %1042 = vmatprep.subr.bf16.mxu1 %v1041_v47  ;;  %v392_v47 = vld [vmem:[#allocation7 + $0x180] sm:$0xff] }
 0x165   :  { %v1075_v51 = vpack.c.bf16 %v394_v48, %v392_v47  ;;  %v670_v47 = vld [vmem:[#allocation8 + $0x40] sm:$0xff]  ;;  %v672_v48 = vld [vmem:[#allocation8 + $0x50] sm:$0xff] }
 0x167   :  { %1044 = vmatpush1.bf16.msra.mxu1 %v1043_v52  ;;  %v1077_v52 = vpack.c.bf16 %v399_v50, %v397_v49  ;;  %v675_v49 = vld [vmem:[#allocation8 + $0x68] sm:$0xff]  ;;  %v677_v50 = vld [vmem:[#allocation8 + $0x78] sm:$0xff] }
 0x168   :  { %1046 = vmatprep.subr.bf16.mxu1 %v1045_v53  ;;  %v396_v53 = vld [vmem:[#allocation7 + $0x1a0] sm:$0xff] }
 0x169   :  { %v1079_v59 = vpack.c.bf16 %v398_v54, %v396_v53  ;;  %v674_v53 = vld [vmem:[#allocation8 + $0x60] sm:$0xff]  ;;  %v676_v54 = vld [vmem:[#allocation8 + $0x70] sm:$0xff] }
 0x16b   :  { %1048 = vmatpush1.bf16.msra.mxu1 %v1047_v60  ;;  %v1081_v60 = vpack.c.bf16 %v403_v58, %v401_v56  ;;  %v679_v56 = vld [vmem:[#allocation8 + $0x88] sm:$0xff]  ;;  %v681_v58 = vld [vmem:[#allocation8 + $0x98] sm:$0xff] }
 0x16c   :  { %1050 = vmatprep.subr.bf16.mxu1 %v1049_v61  ;;  %v400_v61 = vld [vmem:[#allocation7 + $0x1c0] sm:$0xff] }
 0x16d   :  { %v1083_v6 = vpack.c.bf16 %v402_v62, %v400_v61  ;;  %v678_v61 = vld [vmem:[#allocation8 + $0x80] sm:$0xff]  ;;  %v680_v62 = vld [vmem:[#allocation8 + $0x90] sm:$0xff] }
 0x16f   :  { %1052 = vmatpush1.bf16.msra.mxu1 %v1051_v7  ;;  %v1085_v7 = vpack.c.bf16 %v407_v5, %v405_v1  ;;  %v683_v1 = vld [vmem:[#allocation8 + $0xa8] sm:$0xff]  ;;  %v685_v5 = vld [vmem:[#allocation8 + $0xb8] sm:$0xff] }
 0x170   :  { %1054 = vmatprep.subr.bf16.mxu1 %v1053_v8  ;;  %v404_v8 = vld [vmem:[#allocation7 + $0x1e0] sm:$0xff] }
 0x171   :  { %v1087_v11 = vpack.c.bf16 %v406_v9, %v404_v8  ;;  %v682_v8 = vld [vmem:[#allocation8 + $0xa0] sm:$0xff]  ;;  %v684_v9 = vld [vmem:[#allocation8 + $0xb0] sm:$0xff] }
 0x173   :  { %1056 = vmatpush1.bf16.msra.mxu1 %v1055_v17  ;;  %v1309_v17 = vmov 0  }
 0x174   :  { %1058 = vmatprep.subr.bf16.mxu1 %v1057_v18  ;;  %1180 = vset.pattern.permute.xlu0 %v1309_v17  ;;  %v102_v18 = vld [vmem:[%s1636_s2 + $0x8] sm:$0xff] }
 0x175   :  { %1181 = vset.pattern.permute.xlu1 %v1309_v17  ;;  %511 = vperm.xlu0 %1180, %v101_v12   ;;  %v689_v12 = vld [vmem:[#allocation8 + $0xd8] sm:$0xff] }
 0x176   :  { %521 = vperm.xlu1 %1181, %v103_v13   ;;  %v1119_v13 = vpack.c.bf16 %v684_v9, %v682_v8  ;;  %v716_v8 = vld [vmem:[#allocation8 + $0x1b0] sm:$0xff]  ;;  %v719_v9 = vld [vmem:[#allocation8 + $0x1c8] sm:$0xff] }
 0x177   :  { %1060 = vmatpush1.bf16.msra.mxu1 %v1059_v23 }
 0x178   :  { %1062 = vmatprep.subr.bf16.mxu1 %v1061_v25 }
 0x179   :  { %516 = vperm.xlu0 %1180, %v102_v18   ;;  %v686_v18 = vld [vmem:[#allocation8 + $0xc0] sm:$0xff] }
 0x17a   :  { %526 = vperm.xlu1 %1181, %v104_v19   ;;  %v688_v19 = vld [vmem:[#allocation8 + $0xd0] sm:$0xff] }
 0x17b   :  { %1064 = vmatpush1.bf16.msra.mxu1 %v1063_v30  ;;  %v665_v30 = vld [vmem:[#allocation8 + $0x18] sm:$0xff] }
 0x17c   :  { %1066 = vmatprep.subr.bf16.mxu1 %v1065_v32  ;;  %v662_v32 = vld [vmem:[#allocation8] sm:$0xff]  ;;  %v1097_v33 = vpack.c.bf16 %v665_v30, %v663_v29 }
 0x17e   :  { %1098 = vmatprep.subr.bf16.mxu0 %v1097_v33  ;;  %v696_v33 = vld [vmem:[#allocation8 + $0x110] sm:$0xff] }
 0x17f   :  { %1068 = vmatpush1.bf16.msra.mxu1 %v1067_v37  ;;  %v1099_v37 = vpack.c.bf16 %v664_v34, %v662_v32  ;;  %v694_v32 = vld [vmem:[#allocation8 + $0x100] sm:$0xff]  ;;  %v699_v34 = vld [vmem:[#allocation8 + $0x128] sm:$0xff] }
 0x180   :  { %1070 = vmatprep.subr.bf16.mxu1 %v1069_v39  ;;  %v1101_v39 = vpack.c.bf16 %v669_v36, %v667_v35  ;;  %v701_v35 = vld [vmem:[#allocation8 + $0x138] sm:$0xff]  ;;  %v1131_v36 = vpack.c.bf16 %v696_v33, %v694_v32 }
 0x181   :  { %1100 = vmatpush1.bf16.msra.mxu0 %v1099_v37  ;;  %v1133_v37 = vpack.c.bf16 %v701_v35, %v699_v34 }
 0x182   :  { %1102 = vmatprep.subr.bf16.mxu0 %v1101_v39  ;;  %v698_v39 = vld [vmem:[#allocation8 + $0x120] sm:$0xff] }
 0x183   :  { %1072 = vmatpush1.bf16.msra.mxu1 %v1071_v44  ;;  %v1103_v44 = vpack.c.bf16 %v668_v41, %v666_v40  ;;  %v700_v40 = vld [vmem:[#allocation8 + $0x130] sm:$0xff]  ;;  %v703_v41 = vld [vmem:[#allocation8 + $0x148] sm:$0xff] }
 0x184   :  { %1074 = vmatprep.subr.bf16.mxu1 %v1073_v46  ;;  %v1105_v46 = vpack.c.bf16 %v673_v43, %v671_v42  ;;  %v705_v42 = vld [vmem:[#allocation8 + $0x158] sm:$0xff]  ;;  %v1135_v43 = vpack.c.bf16 %v700_v40, %v698_v39 }
 0x185   :  { %1104 = vmatpush1.bf16.msra.mxu0 %v1103_v44  ;;  %v1137_v44 = vpack.c.bf16 %v705_v42, %v703_v41 }
 0x186   :  { %1106 = vmatprep.subr.bf16.mxu0 %v1105_v46  ;;  %v702_v46 = vld [vmem:[#allocation8 + $0x140] sm:$0xff] }
 0x187   :  { %1076 = vmatpush1.bf16.msra.mxu1 %v1075_v51  ;;  %v1107_v51 = vpack.c.bf16 %v672_v48, %v670_v47  ;;  %v704_v47 = vld [vmem:[#allocation8 + $0x150] sm:$0xff]  ;;  %v707_v48 = vld [vmem:[#allocation8 + $0x168] sm:$0xff] }
 0x188   :  { %1078 = vmatprep.subr.bf16.mxu1 %v1077_v52  ;;  %v1109_v52 = vpack.c.bf16 %v677_v50, %v675_v49  ;;  %v709_v49 = vld [vmem:[#allocation8 + $0x178] sm:$0xff]  ;;  %v1139_v50 = vpack.c.bf16 %v704_v47, %v702_v46 }
 0x189   :  { %1108 = vmatpush1.bf16.msra.mxu0 %v1107_v51  ;;  %v1141_v51 = vpack.c.bf16 %v709_v49, %v707_v48 }
 0x18a   :  { %1110 = vmatprep.subr.bf16.mxu0 %v1109_v52  ;;  %v706_v52 = vld [vmem:[#allocation8 + $0x160] sm:$0xff] }
 0x18b   :  { %1080 = vmatpush1.bf16.msra.mxu1 %v1079_v59  ;;  %v1111_v59 = vpack.c.bf16 %v676_v54, %v674_v53  ;;  %v708_v53 = vld [vmem:[#allocation8 + $0x170] sm:$0xff]  ;;  %v711_v54 = vld [vmem:[#allocation8 + $0x188] sm:$0xff] }
 0x18c   :  { %1082 = vmatprep.subr.bf16.mxu1 %v1081_v60  ;;  %v1113_v60 = vpack.c.bf16 %v681_v58, %v679_v56  ;;  %v713_v56 = vld [vmem:[#allocation8 + $0x198] sm:$0xff]  ;;  %v1143_v58 = vpack.c.bf16 %v708_v53, %v706_v52 }
 0x18d   :  { %1112 = vmatpush1.bf16.msra.mxu0 %v1111_v59  ;;  %v1145_v59 = vpack.c.bf16 %v713_v56, %v711_v54 }
 0x18e   :  { %1114 = vmatprep.subr.bf16.mxu0 %v1113_v60  ;;  %v710_v60 = vld [vmem:[#allocation8 + $0x180] sm:$0xff] }
 0x18f   :  { %1084 = vmatpush1.bf16.msra.mxu1 %v1083_v6  ;;  %v1115_v6 = vpack.c.bf16 %v680_v62, %v678_v61  ;;  %v712_v61 = vld [vmem:[#allocation8 + $0x190] sm:$0xff]  ;;  %v715_v62 = vld [vmem:[#allocation8 + $0x1a8] sm:$0xff] }
 0x190   :  { %1086 = vmatprep.subr.bf16.mxu1 %v1085_v7  ;;  %v1117_v7 = vpack.c.bf16 %v685_v5, %v683_v1  ;;  %v717_v1 = vld [vmem:[#allocation8 + $0x1b8] sm:$0xff]  ;;  %v1147_v5 = vpack.c.bf16 %v712_v61, %v710_v60 }
 0x191   :  { %1116 = vmatpush1.bf16.msra.mxu0 %v1115_v6  ;;  %v1149_v6 = vpack.c.bf16 %v717_v1, %v715_v62 }
 0x192   :  { %1118 = vmatprep.subr.bf16.mxu0 %v1117_v7  ;;  %v714_v7 = vld [vmem:[#allocation8 + $0x1a0] sm:$0xff] }
 0x193   :  { %1088 = vmatpush1.bf16.msra.mxu1 %v1087_v11  ;;  %v687_v11 = vld [vmem:[#allocation8 + $0xc8] sm:$0xff] }
 0x194   :  { %v1121_v17 = vpack.c.bf16 %v689_v12, %v687_v11  ;;  %v721_v11 = vld [vmem:[#allocation8 + $0x1d8] sm:$0xff]  ;;  %v1151_v12 = vpack.c.bf16 %v716_v8, %v714_v7 }
 0x195   :  { %1120 = vmatpush1.bf16.msra.mxu0 %v1119_v13  ;;  %v1153_v13 = vpack.c.bf16 %v721_v11, %v719_v9 }
 0x196   :  { %1122 = vmatprep.subr.bf16.mxu0 %v1121_v17  ;;  %v718_v17 = vld [vmem:[#allocation8 + $0x1c0] sm:$0xff] }
 0x1f5   :  { %v1540_v49 = vpop.permute.xlu1 %521 }
 0x1f9   :  { %v1547_v11 = vpop.permute.xlu1 %526 }
 0x229   :  { %v321_v20 = vpop.f32.mrb[0].mxu1 }
 0x22a   :  { %v323_v21 = vpop.f32.mrb[1].mxu1 }
 0x22b   :  { %484 = vmatprep.mubr.f32.mxu1 %v323_v21  ;;  %v693_v21 = vld [vmem:[#allocation8 + $0xf8] sm:$0xff] }
 0x22c   :  { %485 = vmatmul.mubr.f32.vlgmr.msra.gmra.mrb[8].mxu1 %v321_v20  ;;  %v691_v20 = vld [vmem:[#allocation8 + $0xe8] sm:$0xff] }
 0x22d   :  { %v327_v22 = vpop.f32.mrb[2].mxu1 }
 0x22e   :  { %v329_v23 = vpop.f32.mrb[3].mxu1 }
 0x22f   :  { %490 = vmatprep.mubr.f32.mxu1 %v329_v23  ;;  %v1125_v23 = vpack.c.bf16 %v693_v21, %v691_v20  ;;  %v725_v20 = vld [vmem:[#allocation8 + $0x1f8] sm:$0xff] }
 0x230   :  { %491 = vmatmul.mubr.f32.gmra.mrb[10].mxu1 %v327_v22  ;;  %v1123_v22 = vpack.c.bf16 %v688_v19, %v686_v18  ;;  %v720_v18 = vld [vmem:[#allocation8 + $0x1d0] sm:$0xff]  ;;  %v723_v19 = vld [vmem:[#allocation8 + $0x1e8] sm:$0xff] }
 0x231   :  { %v333_v25 = vpop.f32.mrb[4].mxu1  ;;  %v1155_v21 = vpack.c.bf16 %v720_v18, %v718_v17 }
 0x232   :  { %v335_v26 = vpop.f32.mrb[5].mxu1  ;;  %1124 = vmatpush1.bf16.msra.mxu0 %v1123_v22  ;;  %v1157_v22 = vpack.c.bf16 %v725_v20, %v723_v19 }
 0x233   :  { %496 = vmatprep.mubr.f32.mxu1 %v335_v26  ;;  %v692_v26 = vld [vmem:[#allocation8 + $0xf0] sm:$0xff]  ;;  %1126 = vmatprep.subr.bf16.mxu0 %v1125_v23  ;;  %v408_v23 = vld [vmem:[%s1641_s7] sm:$0x3] }
 0x234   :  { %497 = vmatmul.mubr.f32.gmra.mrb[12].mxu1 %v333_v25  ;;  %v690_v25 = vld [vmem:[#allocation8 + $0xe0] sm:$0xff] }
 0x235   :  { %v339_v27 = vpop.f32.mrb[6].mxu1  ;;  %v1127_v29 = vpack.c.bf16 %v692_v26, %v690_v25  ;;  %v413_v25 = vrot.slane %v408_v23, %v1450_v57  ;;  %v1526_v26 = vpop.permute.xlu0 %511 }
 0x236   :  { %v341_v28 = vpop.f32.mrb[7].mxu1 }
 0x237   :  { %502 = vmatprep.mubr.f32.mxu1 %v341_v28  ;;  %v697_v28 = vld [vmem:[#allocation8 + $0x118] sm:$0xff]  ;;  %1128 = vmatpush1.bf16.msra.mxu0 %v1127_v29 }
 0x238   :  { %503 = vmatmul.mubr.f32.gmra.mrb[14].mxu1 %v339_v27  ;;  %v695_v27 = vld [vmem:[#allocation8 + $0x108] sm:$0xff] }
 0x239   :  { %637 = vmatprep.mubr.f32.mxu1 %v1308_v0  ;;  %v1129_v30 = vpack.c.bf16 %v697_v28, %v695_v27  ;;  %v417_v27 = vrot.slane %v408_v23, %v1445_v55  ;;  %v537_v28 = vld [vmem:[%s1642_s8] sm:$0x3]  ;;  %v1536_v39 = vpop.permute.xlu0 %516 }
 0x23a   :  { %v546_v34 = vrot.slane %v537_v28, %v1445_v55 }
 0x23b   :  { %1130 = vmatprep.subr.bf16.mxu0 %v1129_v30 }
 0x23c   :  { %1132 = vmatpush1.bf16.msra.mxu0 %v1131_v36  ;;  %v542_v36 = vrot.slane %v537_v28, %v1450_v57 }
 0x23d   :  { %1134 = vmatprep.subr.bf16.mxu0 %v1133_v37 }
 0x240   :  { %1136 = vmatpush1.bf16.msra.mxu0 %v1135_v43 }
 0x241   :  { %1138 = vmatprep.subr.bf16.mxu0 %v1137_v44 }
 0x244   :  { %1140 = vmatpush1.bf16.msra.mxu0 %v1139_v50 }
 0x245   :  { %1142 = vmatprep.subr.bf16.mxu0 %v1141_v51 }
 0x248   :  { %1144 = vmatpush1.bf16.msra.mxu0 %v1143_v58 }
 0x249   :  { %1146 = vmatprep.subr.bf16.mxu0 %v1145_v59 }
 0x24c   :  { %1148 = vmatpush1.bf16.msra.mxu0 %v1147_v5 }
 0x24d   :  { %1150 = vmatprep.subr.bf16.mxu0 %v1149_v6 }
 0x250   :  { %1152 = vmatpush1.bf16.msra.mxu0 %v1151_v12 }
 0x251   :  { %1154 = vmatprep.subr.bf16.mxu0 %v1153_v13 }
 0x254   :  { %1156 = vmatpush1.bf16.msra.mxu0 %v1155_v21 }
 0x255   :  { %1158 = vmatprep.subr.bf16.mxu0 %v1157_v22 }
 0x2ff   :  { %v486_v29 = vpop.f32.mrb[8].mxu1 }
 0x300   :  { %v487_v30 = vadd.f32 %v486_v29, %v413_v25  ;;  %v488_v32 = vpop.f32.mrb[9].mxu1 }
 0x301   :  { %v489_v33 = vadd.f32 %v488_v32, %v417_v27 }
 0x302   :  { %v529_v35 = vmul.f32 %v1526_v26, %v487_v30 }
 0x303   :  { %v530_v37 = vmul.f32 %v1526_v26, %v489_v33  ;;  %v492_v40 = vpop.f32.mrb[10].mxu1 }
 0x304   :  { %v493_v41 = vadd.f32 %v492_v40, %v413_v25  ;;  %v494_v42 = vpop.f32.mrb[11].mxu1  ;;  %v549_v46 = vadd.f32 %v542_v36, %v529_v35 }
 0x305   :  { %v550_v43 = vadd.f32 %v546_v34, %v530_v37  ;;  %v495_v44 = vadd.f32 %v494_v42, %v417_v27 }
 0x306   :  { %v531_v47 = vmul.f32 %v1536_v39, %v493_v41  ;;  %v557_v59 = vmax.f32 %v549_v46, 0.0  ;;  %v835_v41 = vld [vmem:[%s1645_s11] sm:$0x3] }
 0x307   :  { %v532_v48 = vmul.f32 %v1536_v39, %v495_v44  ;;  %v498_v50 = vpop.f32.mrb[12].mxu1  ;;  %v558_v54 = vmax.f32 %v550_v43, 0.0  ;;  %v840_v46 = vrot.slane %v835_v41, %v1450_v57 }
 0x308   :  { %v551_v51 = vadd.f32 %v542_v36, %v531_v47  ;;  %v499_v52 = vadd.f32 %v498_v50, %v413_v25  ;;  %v500_v53 = vpop.f32.mrb[13].mxu1  ;;  %v1556_v18 = vadd.f32 %v557_v59, %v1460_v4  ;;  %v844_v50 = vrot.slane %v835_v41, %v1445_v55 }
 0x309   :  { %v552_v56 = vadd.f32 %v546_v34, %v532_v48  ;;  %v501_v58 = vadd.f32 %v500_v53, %v417_v27  ;;  %v1550_v13 = vadd.f32 %v558_v54, %v1456_v2 }
 0x30a   :  { %v559_v60 = vmax.f32 %v551_v51, 0.0  ;;  %v533_v61 = vmul.f32 %v1540_v49, %v499_v52 }
 0x30b   :  { %v560_v62 = vmax.f32 %v552_v56, 0.0  ;;  %v534_v1 = vmul.f32 %v1540_v49, %v501_v58  ;;  %v504_v5 = vpop.f32.mrb[14].mxu1 }
 0x30c   :  { %v1545_v6 = vadd.f32 %v559_v60, %v1454_v63  ;;  %v505_v7 = vadd.f32 %v504_v5, %v413_v25  ;;  %v506_v8 = vpop.f32.mrb[15].mxu1  ;;  %v553_v19 = vadd.f32 %v542_v36, %v533_v61 }
 0x30d   :  { %v554_v9 = vadd.f32 %v546_v34, %v534_v1  ;;  %v507_v12 = vadd.f32 %v506_v8, %v417_v27  ;;  %v1553_v17 = vadd.f32 %v560_v62, %v1458_v3 }
 0x30e   :  { %v535_v20 = vmul.f32 %v1547_v11, %v505_v7  ;;  %v1091_v23 = vpack.c.bf16 %v1545_v6, %v1556_v18  ;;  %v561_v3 = vmax.f32 %v553_v19, 0.0 }
 0x30f   :  { %v536_v63 = vmul.f32 %v1547_v11, %v507_v12  ;;  %v1089_v21 = vpack.c.bf16 %v1553_v17, %v1550_v13  ;;  %v562_v2 = vmax.f32 %v554_v9, 0.0 }
 0x310   :  { %v555_v22 = vadd.f32 %v542_v36, %v535_v20  ;;  %v1574_v32 = vadd.f32 %v561_v3, %v1472_v16 }
 0x311   :  { %v556_v25 = vadd.f32 %v546_v34, %v536_v63  ;;  %1090 = vmatprep.subr.bf16.mxu1 %v1089_v21  ;;  %v1568_v29 = vadd.f32 %v562_v2, %v1468_v14  ;;  %v724_v14 = vld [vmem:[#allocation8 + $0x1f0] sm:$0xff] }
 0x312   :  { %v563_v27 = vmax.f32 %v555_v22, 0.0  ;;  %1092 = vmatpush1.bf16.msra.mxu1 %v1091_v23 }
 0x313   :  { %v564_v4 = vmax.f32 %v556_v25, 0.0 }
 0x314   :  { %v1565_v28 = vadd.f32 %v563_v27, %v1466_v10  ;;  %v722_v10 = vld [vmem:[#allocation8 + $0x1e0] sm:$0xff] }
 0x315   :  { %v1571_v30 = vadd.f32 %v564_v4, %v1470_v15  ;;  %v1159_v15 = vpack.c.bf16 %v724_v14, %v722_v10 }
 0x316   :  { %v1095_v34 = vpack.c.bf16 %v1565_v28, %v1574_v32 }
 0x317   :  { %v1093_v33 = vpack.c.bf16 %v1571_v30, %v1568_v29  ;;  %1160 = vmatpush1.bf16.msra.mxu0 %v1159_v15 }
 0x319   :  { %1094 = vmatprep.subr.bf16.mxu1 %v1093_v33 }
 0x31a   :  { %1096 = vmatpush1.bf16.msra.mxu1 %v1095_v34 }
 0x31d   :  { %979 = vmatmul.mubr.msk.f32.vlgmr.msra.gmra.mrb[16].mxu1 %vm242_vm0, %v1481_v24 }
 0x31e   :  { %643 = vmatprep.mubr.f32.mxu1 %v1308_v0 }
 0x321   :  { %980 = vmatmul.mubr.msk.f32.gmra.mrb[18].mxu1 %vm242_vm0, %v1489_v31 }
 0x322   :  { %649 = vmatprep.mubr.f32.mxu1 %v1308_v0 }
 0x325   :  { %981 = vmatmul.mubr.msk.f32.gmra.mrb[20].mxu1 %vm242_vm0, %v1497_v38 }
 0x326   :  { %655 = vmatprep.mubr.f32.mxu1 %v1308_v0 }
 0x329   :  { %982 = vmatmul.mubr.msk.f32.gmra.mrb[22].mxu1 %vm242_vm0, %v1505_v45 }
 0x32a   :  { %939 = vmatprep.mubr.f32.mxu1 %v1308_v0  ;;  %v726_v0 = vld [vmem:[%s1644_s10] sm:$0x3] }
 0x32b   :  { %v731_v40 = vrot.slane %v726_v0, %v1450_v57  ;;  %v735_v42 = vrot.slane %v726_v0, %v1445_v55 }
 0x3f0   :  { %v639_v16 = vpop.f32.mrb[16].mxu1 }
 0x3f1   :  { %v641_v24 = vpop.f32.mrb[17].mxu1 }
 0x3f2   :  { %802 = vmatprep.mubr.f32.mxu0 %v641_v24 }
 0x3f3   :  { %803 = vmatmul.mubr.f32.vlgmr.msra.gmra.mrb[8].mxu0 %v639_v16 }
 0x3f4   :  { %v645_v31 = vpop.f32.mrb[18].mxu1 }
 0x3f5   :  { %v647_v35 = vpop.f32.mrb[19].mxu1 }
 0x3f6   :  { %808 = vmatprep.mubr.f32.mxu0 %v647_v35 }
 0x3f7   :  { %809 = vmatmul.mubr.f32.gmra.mrb[10].mxu0 %v645_v31 }
 0x3f8   :  { %v651_v38 = vpop.f32.mrb[20].mxu1 }
 0x3f9   :  { %v653_v36 = vpop.f32.mrb[21].mxu1 }
 0x3fa   :  { %814 = vmatprep.mubr.f32.mxu0 %v653_v36 }
 0x3fb   :  { %815 = vmatmul.mubr.f32.gmra.mrb[12].mxu0 %v651_v38 }
 0x3fc   :  { %v657_v37 = vpop.f32.mrb[22].mxu1 }
 0x3fd   :  { %v659_v45 = vpop.f32.mrb[23].mxu1 }
 0x3fe   :  { %820 = vmatprep.mubr.f32.mxu0 %v659_v45 }
 0x3ff   :  { %821 = vmatmul.mubr.f32.gmra.mrb[14].mxu0 %v657_v37 }
 0x4c6   :  { %v804_v43 = vpop.f32.mrb[8].mxu0 }
 0x4c7   :  { %v805_v44 = vadd.f32 %v804_v43, %v731_v40  ;;  %v806_v47 = vpop.f32.mrb[9].mxu0 }
 0x4c8   :  { %v807_v48 = vadd.f32 %v806_v47, %v735_v42 }
 0x4c9   :  { %v827_v51 = vmul.f32 %v805_v44, %v1526_v26 }
 0x4ca   :  { %v828_v52 = vmul.f32 %v807_v48, %v1526_v26  ;;  %v810_v53 = vpop.f32.mrb[10].mxu0 }
 0x4cb   :  { %v847_v54 = vadd.f32 %v840_v46, %v827_v51  ;;  %v811_v56 = vadd.f32 %v810_v53, %v731_v40  ;;  %v812_v58 = vpop.f32.mrb[11].mxu0 }
 0x4cc   :  { %v848_v59 = vadd.f32 %v844_v50, %v828_v52  ;;  %v813_v60 = vadd.f32 %v812_v58, %v735_v42 }
 0x4cd   :  { %v829_v61 = vmul.f32 %v811_v56, %v1536_v39  ;;  %v855_v57 = vmax.f32 %v847_v54, 0.0 }
 0x4ce   :  { %v830_v62 = vmul.f32 %v813_v60, %v1536_v39  ;;  %v816_v1 = vpop.f32.mrb[12].mxu0  ;;  %v856_v55 = vmax.f32 %v848_v59, 0.0 }
 0x4cf   :  { %v849_v5 = vadd.f32 %v840_v46, %v829_v61  ;;  %v817_v7 = vadd.f32 %v816_v1, %v731_v40  ;;  %v818_v8 = vpop.f32.mrb[13].mxu0  ;;  %v863_v22 = vadd.f32 %v855_v57, %v1556_v18 }
 0x4d0   :  { %v850_v9 = vadd.f32 %v844_v50, %v830_v62  ;;  %v819_v12 = vadd.f32 %v818_v8, %v735_v42  ;;  %v864_v4 = vadd.f32 %v856_v55, %v1550_v13 }
 0x4d1   :  { %v857_v19 = vmax.f32 %v849_v5, 0.0  ;;  %v831_v26 = vmul.f32 %v817_v7, %v1540_v49 }
 0x4d2   :  { %v858_v20 = vmax.f32 %v850_v9, 0.0  ;;  %v832_v63 = vmul.f32 %v819_v12, %v1540_v49  ;;  %v822_v21 = vpop.f32.mrb[14].mxu0 }
 0x4d3   :  { %v865_v23 = vadd.f32 %v857_v19, %v1545_v6  ;;  %v851_v39 = vadd.f32 %v840_v46, %v831_v26  ;;  %v823_v2 = vadd.f32 %v822_v21, %v731_v40  ;;  %v824_v25 = vpop.f32.mrb[15].mxu0 }
 0x4d4   :  { %v852_v3 = vadd.f32 %v844_v50, %v832_v63  ;;  %v825_v27 = vadd.f32 %v824_v25, %v735_v42  ;;  %v866_v33 = vadd.f32 %v858_v20, %v1553_v17 }
 0x4d5   :  { %v833_v34 = vmul.f32 %v823_v2, %v1547_v11  ;;  %v1163_v10 = vpack.c.bf16 %v865_v23, %v863_v22  ;;  %v859_v15 = vmax.f32 %v851_v39, 0.0 }
 0x4d6   :  { %v834_v14 = vmul.f32 %v825_v27, %v1547_v11  ;;  %v1161_v49 = vpack.c.bf16 %v866_v33, %v864_v4  ;;  %v860_v18 = vmax.f32 %v852_v3, 0.0  ;;  %v871_v11 = vld [vmem:[%s1637_s3] sm:$0x3] }
 0x4d7   :  { %v853_v16 = vadd.f32 %v840_v46, %v833_v34  ;;  %v867_v35 = vadd.f32 %v859_v15, %v1574_v32 }
 0x4d8   :  { %v854_v24 = vadd.f32 %v844_v50, %v834_v14  ;;  %1162 = vmatprep.subr.bf16.mxu1 %v1161_v49  ;;  %v868_v17 = vadd.f32 %v860_v18, %v1568_v29 }
 0x4d9   :  { %v861_v6 = vmax.f32 %v853_v16, 0.0  ;;  %1164 = vmatpush1.bf16.msra.mxu1 %v1163_v10 }
 0x4da   :  { %v862_v31 = vmax.f32 %v854_v24, 0.0 }
 0x4db   :  { %v869_v13 = vadd.f32 %v861_v6, %v1565_v28 }
 0x4dc   :  { %v870_v38 = vadd.f32 %v862_v31, %v1571_v30 }
 0x4dd   :  { %v1167_v36 = vpack.c.bf16 %v869_v13, %v867_v35 }
 0x4de   :  { %v1165_v37 = vpack.c.bf16 %v870_v38, %v868_v17 }
 0x4e0   :  { %1166 = vmatprep.subr.bf16.mxu1 %v1165_v37 }
 0x4e1   :  { %1168 = vmatpush1.bf16.msra.mxu1 %v1167_v36 }
 0x4e4   :  { %983 = vmatmul.mubr.msk.f32.vlgmr.msra.gmra.mrb[24].mxu1 %vm242_vm0, %v871_v11 }
 0x5b7   :  { %v941_v45 = vpop.f32.mrb[24].mxu1 }
 0x5b8   :  { %v943_v32 = vpop.f32.mrb[25].mxu1 }
 0x5b9   :  { %v948_v0 = vcombine.low %v941_v45, %v943_v32 }
 0x5bb   :  { %984 = vst.sshfl [vmem:[#allocation10] sm:$0x33 pattern:$0x76325410] %v948_v0 }
 0x5bc   :  { %1281 = shalt.err (!%p1278_p8)
}
 0x5bd   :  { %s1282_s3 = scalar_lea.hbm %s1646_s12, 64 }
 0x5be   :  { %p1283_p9 = scmp.ne.s32.totalorder %s1646_s12, %s1282_s3  ;;  %p1286_p10 = scmp.lt.u32.totalorder %s1282_s3, %s1646_s12 }
 0x5c0   :  { %p1288_p11 = pnand %p1286_p10, %p1283_p9 }
 0x5c2   :  { %1291 = shalt.err (!%p1288_p11)
}
 0x5c3   :  { %967 = dma.vmem_to_hbm [thread:$0]  %s965_s9, 64, %s1646_s12, [#allocation4]  }
 0x5c4   :  { %1298 = dma.done.wait [#allocation4], 64  }
 0x5c5   :  { %1299 = vsyncadd [#allocation4], 4294967232 }
 0x5c6   :  { %971 = vsyncpa [#allocation3], 1 }
 0x5c7   :  { %972 = vsyncpa [#allocation6], 1 }
 0x5c8   :  { %973 = vsyncpa [#allocation9], 1 }
 0x5c9   :  { %974 = vsyncpa [#allocation4], 1 }

</bundles_post_ra>
